<compile_context>
chip_gen: v6e
topology: v6e:2x2x1
jax: 0.10.0
libtpu: 0.0.40
codegen_flags: <defaults>
</compile_context>

<pallas_src>
from typing import NamedTuple, Tuple

import jax
import jax.numpy as jnp
from jax.experimental import pallas as pl
from jax.experimental.pallas import tpu as pltpu


# ------------------------------------------------------------------ utilities
def _round_up(n: int, m: int) -> int:
    return ((n + m - 1) // m) * m


class PackedParams(NamedTuple):
    w_slab: jax.Array            # (sum(padded_in_i), max(padded_out)) bf16, zero-padded
    b_slab: jax.Array            # (8, max(padded_out)) f32, row i = bias of layer i
    padded_dims: Tuple[int, ...] # padded layer widths [D, 3D, 5D, 3D, D, 5] -> 128-multiples
    row_offs: Tuple[int, ...]    # row offset of each weight inside w_slab
    input_size: int
    output_size: int


# ------------------------------------------------------------------ parameters
def init_params(key, input_size, output_size=5):
    """Deterministic init. Weights stored as (in, out); biases as (1, out)."""
    dims = [input_size, input_size * 3, input_size * 5,
            input_size * 3, input_size, output_size]
    params = []
    for i in range(len(dims) - 1):
        key, kw, kb = jax.random.split(key, 3)
        bound = 1.0 / (dims[i] ** 0.5)
        w = jax.random.uniform(kw, (dims[i], dims[i + 1]),
                               minval=-bound, maxval=bound, dtype=jnp.float32)
        b = jax.random.uniform(kb, (1, dims[i + 1]),
                               minval=-bound, maxval=bound, dtype=jnp.float32)
        params.append((w, b))
    return params


def pack_params(params, input_size, output_size=5):
    """Pad every layer width to a 128-lane multiple and pack all weights into a
    single bf16 slab (one DMA) and all biases into a single f32 slab."""
    dims = [input_size] + [w.shape[1] for (w, _) in params]
    padded = tuple(_round_up(d, 128) for d in dims)
    w_cols = max(padded[1:])

    row_offs = []
    off = 0
    for i in range(len(params)):
        row_offs.append(off)
        off += padded[i]
    w_rows = off

    w_slab = jnp.zeros((w_rows, w_cols), jnp.bfloat16)
    b_rows = _round_up(max(len(params), 8), 8)
    b_slab = jnp.zeros((b_rows, w_cols), jnp.float32)
    for i, (w, b) in enumerate(params):
        r0 = row_offs[i]
        w_slab = w_slab.at[r0:r0 + w.shape[0], 0:w.shape[1]].set(
            w.astype(jnp.bfloat16))
        b_slab = b_slab.at[i, 0:b.shape[-1]].set(
            b.reshape(-1).astype(jnp.float32))

    return PackedParams(w_slab, b_slab, padded, tuple(row_offs),
                        input_size, output_size)


# ------------------------------------------------------------------ kernel
def _make_kernel(padded_dims, row_offs, n_layers):
    """Kernel body closed over the static (padded) layer geometry."""

    def kernel(x_ref, w_ref, b_ref, o_ref):
        h = x_ref[...]                                       # (TILE_B, Dp) f32
        for i in range(n_layers):
            r0 = row_offs[i]
            rows = padded_dims[i]
            cols = padded_dims[i + 1]
            w = w_ref[r0:r0 + rows, 0:cols]                  # bf16, static slice
            b = b_ref[i:i + 1, 0:cols]                       # (1, cols) f32
            h = jnp.dot(h.astype(jnp.bfloat16), w,
                        preferred_element_type=jnp.float32) + b
            if i < n_layers - 1:
                h = jnp.maximum(h, 0.0)
        o_ref[...] = h                                       # lane-dense (TILE_B, 128)

    return kernel


# ------------------------------------------------------------------ wrappers
def simple_classifier_forward_batched(xs, packed: PackedParams):
    """xs: (B, d0, d1) float32 -> (B, 5) float32."""
    B = xs.shape[0]
    D = packed.input_size
    x2 = xs.reshape(B, D).astype(jnp.float32)

    Dp = packed.padded_dims[0]
    out_p = packed.padded_dims[-1]
    n_layers = len(packed.row_offs)

    # Batch tile: 128 rows per MXU pass when the batch is large enough,
    # otherwise just sublane-pad the whole (small) batch into one grid step.
    tile_b = 128 if B >= 128 else _round_up(max(B, 1), 8)
    Bp = _round_up(B, tile_b)

    x_pad = jnp.zeros((Bp, Dp), jnp.float32).at[:B, :D].set(x2)

    kernel = _make_kernel(packed.padded_dims, packed.row_offs, n_layers)
    w_slab, b_slab = packed.w_slab, packed.b_slab

    out = pl.pallas_call(
        kernel,
        out_shape=jax.ShapeDtypeStruct((Bp, out_p), jnp.float32),
        grid=(Bp // tile_b,),
        in_specs=[
            pl.BlockSpec((tile_b, Dp), lambda i: (i, 0)),        # x rows: tiled
            pl.BlockSpec(w_slab.shape, lambda i: (0, 0)),        # weights: resident
            pl.BlockSpec(b_slab.shape, lambda i: (0, 0)),        # biases: resident
        ],
        out_specs=pl.BlockSpec((tile_b, out_p), lambda i: (i, 0)),
        compiler_params=pltpu.CompilerParams(
            dimension_semantics=("parallel",)),                   # 2 TCs on v7x
    )(x_pad, w_slab, b_slab)

    return out[:B, :packed.output_size]


def simple_classifier_forward(x, packed: PackedParams):
    """x: (d0, d1) float32 -> (5,) float32 (matches the PyTorch module)."""
    return simple_classifier_forward_batched(x[None], packed)[0]


# ------------------------------------------------------------------ reference
def reference_forward_batched(xs, params):
    """Pure-JAX reference with the same bf16-weight / f32-accumulate precision."""
    B = xs.shape[0]
    h = xs.reshape(B, -1).astype(jnp.float32)
    n = len(params)
    for i, (w, b) in enumerate(params):
        h = jnp.dot(h.astype(jnp.bfloat16), w.astype(jnp.bfloat16),
                    preferred_element_type=jnp.float32) + b.reshape(1, -1)
        if i < n - 1:
            h = jnp.maximum(h, 0.0)
    return h


# ------------------------------------------------------------------ main
if __name__ == "__main__":
    key = jax.random.PRNGKey(0)
    kx, kp, kb = jax.random.split(key, 3)

    d0, d1 = 2, 16                       # x.view(d0*d1) -> input_size = 32
    input_size = d0 * d1

    params = init_params(kp, input_size)
    packed = pack_params(params, input_size)

    # Single-sample path (the exact module semantics).
    x = jax.random.normal(kx, (d0, d1), dtype=jnp.float32)
    out = jax.block_until_ready(simple_classifier_forward(x, packed))
    ref = reference_forward_batched(x[None], params)[0]
    assert out.shape == (5,)
    assert jnp.allclose(out, ref, atol=2e-3, rtol=2e-3), (out, ref)

    # Batched path (the performance-relevant path: 128-row MXU tiles, 2-step grid).
    B = 256
    xb = jax.random.normal(kb, (B, d0, d1), dtype=jnp.float32)
    outb = jax.block_until_ready(simple_classifier_forward_batched(xb, packed))
    refb = reference_forward_batched(xb, params)
    assert outb.shape == (B, 5)
    assert jnp.allclose(outb, refb, atol=2e-3, rtol=2e-3)

    print("KERNEL_OK")
</pallas_src>

<mosaic_0001>
module attributes {stable_mosaic.version = 11 : i64} {
  func.func @kernel(%arg0: i32, %arg1: memref<8x128xf32, #tpu.memory_space<vmem>>, %arg2: memref<768x256xbf16, #tpu.memory_space<vmem>>, %arg3: memref<8x256xf32, #tpu.memory_space<vmem>>, %arg4: memref<8x128xf32, #tpu.memory_space<vmem>>) attributes {dimension_semantics = [#tpu.dimension_semantics<parallel>], iteration_bounds = array<i64: 1>, scalar_prefetch = 0 : i64, scratch_operands = 0 : i64, tpu.core_type = #tpu.core_type<tc>, window_params = [{transform_indices = @transform_0, window_bounds = array<i64: 8, 128>}, {pipeline_mode = #tpu.pipeline_mode<synchronous>, transform_indices = @transform_1, window_bounds = array<i64: 768, 256>}, {pipeline_mode = #tpu.pipeline_mode<synchronous>, transform_indices = @transform_2, window_bounds = array<i64: 8, 256>}, {transform_indices = @transform_3, window_bounds = array<i64: 8, 128>}]} {
    %c0 = arith.constant 0 : index
    %c0_0 = arith.constant 0 : index
    %0 = vector.load %arg1[%c0, %c0_0] : memref<8x128xf32, #tpu.memory_space<vmem>>, vector<8x128xf32>
    %c0_1 = arith.constant 0 : index
    %c0_2 = arith.constant 0 : index
    %1 = vector.load %arg2[%c0_1, %c0_2] : memref<768x256xbf16, #tpu.memory_space<vmem>>, vector<128x128xbf16>
    %c0_3 = arith.constant 0 : index
    %c0_4 = arith.constant 0 : index
    %2 = vector.load %arg3[%c0_3, %c0_4] : memref<8x256xf32, #tpu.memory_space<vmem>>, vector<1x128xf32>
    %3 = arith.truncf %0 : vector<8x128xf32> to vector<8x128xbf16>
    %cst = arith.constant dense<0.000000e+00> : vector<8x128xf32>
    %4 = tpu.matmul %3, %1, %cst {dimension_numbers = #tpu.dot_dimension_numbers<[1], [0], [0], [1], [0, 0, 1, 1], [], []>} : vector<8x128xbf16>, vector<128x128xbf16>, vector<8x128xf32> -> vector<8x128xf32>
    %5 = vector.broadcast %2 : vector<1x128xf32> to vector<8x128xf32>
    %6 = arith.addf %4, %5 : vector<8x128xf32>
    %cst_5 = arith.constant 0.000000e+00 : f32
    %7 = vector.broadcast %cst_5 : f32 to vector<8x128xf32>
    %8 = arith.maximumf %6, %7 : vector<8x128xf32>
    %c128 = arith.constant 128 : index
    %c0_6 = arith.constant 0 : index
    %9 = vector.load %arg2[%c128, %c0_6] : memref<768x256xbf16, #tpu.memory_space<vmem>>, vector<128x256xbf16>
    %c1 = arith.constant 1 : index
    %c0_7 = arith.constant 0 : index
    %10 = vector.load %arg3[%c1, %c0_7] : memref<8x256xf32, #tpu.memory_space<vmem>>, vector<1x256xf32>
    %11 = arith.truncf %8 : vector<8x128xf32> to vector<8x128xbf16>
    %cst_8 = arith.constant dense<0.000000e+00> : vector<8x256xf32>
    %12 = tpu.matmul %11, %9, %cst_8 {dimension_numbers = #tpu.dot_dimension_numbers<[1], [0], [0], [1], [0, 0, 1, 1], [], []>} : vector<8x128xbf16>, vector<128x256xbf16>, vector<8x256xf32> -> vector<8x256xf32>
    %13 = vector.broadcast %10 : vector<1x256xf32> to vector<8x256xf32>
    %14 = arith.addf %12, %13 : vector<8x256xf32>
    %cst_9 = arith.constant 0.000000e+00 : f32
    %15 = vector.broadcast %cst_9 : f32 to vector<8x256xf32>
    %16 = arith.maximumf %14, %15 : vector<8x256xf32>
    %c256 = arith.constant 256 : index
    %c0_10 = arith.constant 0 : index
    %17 = vector.load %arg2[%c256, %c0_10] : memref<768x256xbf16, #tpu.memory_space<vmem>>, vector<256x128xbf16>
    %c2 = arith.constant 2 : index
    %c0_11 = arith.constant 0 : index
    %18 = vector.load %arg3[%c2, %c0_11] : memref<8x256xf32, #tpu.memory_space<vmem>>, vector<1x128xf32>
    %19 = arith.truncf %16 : vector<8x256xf32> to vector<8x256xbf16>
    %cst_12 = arith.constant dense<0.000000e+00> : vector<8x128xf32>
    %20 = tpu.matmul %19, %17, %cst_12 {dimension_numbers = #tpu.dot_dimension_numbers<[1], [0], [0], [1], [0, 0, 1, 1], [], []>} : vector<8x256xbf16>, vector<256x128xbf16>, vector<8x128xf32> -> vector<8x128xf32>
    %21 = vector.broadcast %18 : vector<1x128xf32> to vector<8x128xf32>
    %22 = arith.addf %20, %21 : vector<8x128xf32>
    %cst_13 = arith.constant 0.000000e+00 : f32
    %23 = vector.broadcast %cst_13 : f32 to vector<8x128xf32>
    %24 = arith.maximumf %22, %23 : vector<8x128xf32>
    %c512 = arith.constant 512 : index
    %c0_14 = arith.constant 0 : index
    %25 = vector.load %arg2[%c512, %c0_14] : memref<768x256xbf16, #tpu.memory_space<vmem>>, vector<128x128xbf16>
    %c3 = arith.constant 3 : index
    %c0_15 = arith.constant 0 : index
    %26 = vector.load %arg3[%c3, %c0_15] : memref<8x256xf32, #tpu.memory_space<vmem>>, vector<1x128xf32>
    %27 = arith.truncf %24 : vector<8x128xf32> to vector<8x128xbf16>
    %cst_16 = arith.constant dense<0.000000e+00> : vector<8x128xf32>
    %28 = tpu.matmul %27, %25, %cst_16 {dimension_numbers = #tpu.dot_dimension_numbers<[1], [0], [0], [1], [0, 0, 1, 1], [], []>} : vector<8x128xbf16>, vector<128x128xbf16>, vector<8x128xf32> -> vector<8x128xf32>
    %29 = vector.broadcast %26 : vector<1x128xf32> to vector<8x128xf32>
    %30 = arith.addf %28, %29 : vector<8x128xf32>
    %cst_17 = arith.constant 0.000000e+00 : f32
    %31 = vector.broadcast %cst_17 : f32 to vector<8x128xf32>
    %32 = arith.maximumf %30, %31 : vector<8x128xf32>
    %c640 = arith.constant 640 : index
    %c0_18 = arith.constant 0 : index
    %33 = vector.load %arg2[%c640, %c0_18] : memref<768x256xbf16, #tpu.memory_space<vmem>>, vector<128x128xbf16>
    %c4 = arith.constant 4 : index
    %c0_19 = arith.constant 0 : index
    %34 = vector.load %arg3[%c4, %c0_19] : memref<8x256xf32, #tpu.memory_space<vmem>>, vector<1x128xf32>
    %35 = arith.truncf %32 : vector<8x128xf32> to vector<8x128xbf16>
    %cst_20 = arith.constant dense<0.000000e+00> : vector<8x128xf32>
    %36 = tpu.matmul %35, %33, %cst_20 {dimension_numbers = #tpu.dot_dimension_numbers<[1], [0], [0], [1], [0, 0, 1, 1], [], []>} : vector<8x128xbf16>, vector<128x128xbf16>, vector<8x128xf32> -> vector<8x128xf32>
    %37 = vector.broadcast %34 : vector<1x128xf32> to vector<8x128xf32>
    %38 = arith.addf %36, %37 : vector<8x128xf32>
    %c0_21 = arith.constant 0 : index
    %c0_22 = arith.constant 0 : index
    %39 = vector.load %arg4[%c0_21, %c0_22] : memref<8x128xf32, #tpu.memory_space<vmem>>, vector<8x128xf32>
    tpu.vector_store %arg4[%c0_21, %c0_22], %38 {strides = array<i32>} : memref<8x128xf32, #tpu.memory_space<vmem>>, vector<8x128xf32>,
    return
  }
  func.func @transform_0(%arg0: i32) -> (i32, i32) {
    %c0_i32 = arith.constant 0 : i32
    %c0_i32_0 = arith.constant 0 : i32
    return %arg0, %c0_i32 : i32, i32
  }
  func.func @transform_1(%arg0: i32) -> (i32, i32) {
    %c0_i32 = arith.constant 0 : i32
    %c0_i32_0 = arith.constant 0 : i32
    %c0_i32_1 = arith.constant 0 : i32
    return %c0_i32, %c0_i32_0 : i32, i32
  }
  func.func @transform_2(%arg0: i32) -> (i32, i32) {
    %c0_i32 = arith.constant 0 : i32
    %c0_i32_0 = arith.constant 0 : i32
    %c0_i32_1 = arith.constant 0 : i32
    return %c0_i32, %c0_i32_0 : i32, i32
  }
  func.func @transform_3(%arg0: i32) -> (i32, i32) {
    %c0_i32 = arith.constant 0 : i32
    %c0_i32_0 = arith.constant 0 : i32
    return %arg0, %c0_i32 : i32, i32
  }
}

</mosaic_0001>

<bundles_post_ra>
// kernel: tpu_custom_call.1
= control target key start
LH: loop header
LB: loop body
LE: loop exit
PB: predicated region body
PF: predicated region fallthrough
CT: control target
= control target key end

     0   :  { %8 = vsyncpa [#allocation3], 0  ;;  %s1111_s0 = inlined_call_operand.hbm [shape: f32[8,128], index: 0, kind: input, shape index: {}]   ;;  %s1112_s1 = inlined_call_operand.hbm [shape: bf16[768,256], index: 1, kind: input, shape index: {}]   ;;  %s1113_s2 = inlined_call_operand.hbm [shape: f32[8,256], index: 2, kind: input, shape index: {}]   ;;  %s1114_s3 = inlined_call_operand.hbm [shape: f32[8,128], index: 3, kind: output, shape index: {}]  }
   0x1   :  { %9 = vsyncpa [#allocation6], 0 }
   0x2   :  { %10 = vsyncpa [#allocation4], 0  ;;  %s1040_s12 = smov [#allocation5]  }
   0x3   :  { %s26_s13 = sshll.u32 %s1040_s12, 4  ;;  %s27_s13 = int_to_ptr.vmem [resolvable:$true] %s26_s13 }
   0x4   :  { %s962_s14 = scalar_lea.vmem %s27_s13, 12288  ;;  %p967_p1 = scmp.lt.s32.totalorder %s27_s13, %s27_s13 }
   0x5   :  { %p963_p0 = scmp.ne.s32.totalorder %s27_s13, %s962_s14  ;;  %p968_p2 = scmp.lt.s32.totalorder %s962_s14, %s962_s14 }
   0x7   :  { %p969_p3 = por %p968_p2, %p967_p1 }
   0x9   :  { %p970_p4 = pnand %p969_p3, %p963_p0 }
   0xb   :  { %973 = shalt.err (!%p970_p4)
}
   0xc   :  { %s1041_s15 = smov 128   ;;  %s1042_s16 = smov 8  }
   0xd   :  { %32 = dma.hbm_to_vmem [thread:$0]  %s1112_s1, 12288, %s27_s13, [#allocation6], %s1041_s15, %s1041_s15, %s1042_s16  }
   0xe   :  { %s1043_s19 = smov [#allocation2]   ;;  %s1044_s21 = smov [#allocation7]  }
   0xf   :  { %s17_s20 = sshll.u32 %s1043_s19, 4  ;;  %s39_s22 = sshll.u32 %s1044_s21, 4  ;;  %s18_s20 = int_to_ptr.vmem [resolvable:$true] %s17_s20  ;;  %s40_s22 = int_to_ptr.vmem [resolvable:$true] %s39_s22 }
  0x10   :  { %s982_s23 = scalar_lea.vmem %s18_s20, 128  ;;  %p987_p6 = scmp.lt.s32.totalorder %s18_s20, %s18_s20 }
  0x11   :  { %p983_p5 = scmp.ne.s32.totalorder %s18_s20, %s982_s23  ;;  %p988_p7 = scmp.lt.s32.totalorder %s982_s23, %s982_s23 }
  0x13   :  { %p989_p8 = por %p988_p7, %p987_p6 }
  0x15   :  { %p990_p9 = pnand %p989_p8, %p983_p5 }
  0x17   :  { %993 = shalt.err (!%p990_p9)
}
  0x18   :  { %20 = dma.hbm_to_vmem [thread:$0]  %s1111_s0, 128, %s18_s20, [#allocation3]  }
  0x19   :  { %s1002_s26 = scalar_lea.vmem %s40_s22, 256  ;;  %p1007_p11 = scmp.lt.s32.totalorder %s40_s22, %s40_s22 }
  0x1a   :  { %p1003_p10 = scmp.ne.s32.totalorder %s40_s22, %s1002_s26  ;;  %p1008_p12 = scmp.lt.s32.totalorder %s1002_s26, %s1002_s26 }
  0x1c   :  { %p1009_p13 = por %p1008_p12, %p1007_p11 }
  0x1e   :  { %p1010_p0 = pnand %p1009_p13, %p1003_p10 }
  0x20   :  { %1013 = shalt.err (!%p1010_p0)
}
  0x21   :  { %42 = dma.hbm_to_vmem [thread:$0]  %s1113_s2, 256, %s40_s22, [#allocation6]  }
  0x22   :  { %1034 = dma.done.wait [#allocation3], 128  }
  0x23   :  { %1035 = vsyncadd [#allocation3], 4294967168 }
  0x24   :  { %1036 = dma.done.wait [#allocation6], 12544  }
  0x25   :  { %1037 = vsyncadd [#allocation6], 4294954752  ;;  %v1045_v0 = vmov 0.0   ;;  %vm1046_vm0 = vmmov 0   ;;  %v890_v1 = vld [vmem:[#allocation5 + $0x70] ss:$8 sps:$4 sm:$0xff]   ;;  %v181_v57 = vlaneseq }
  0x26   :  { %821 = vmatprep.subr.bf16.mxu0 %v1045_v0  ;;  %837 = vmatprep.mubr.msk.bf16.mxu0 %vm1046_vm0, %v1045_v0  ;;  %v891_v2 = vld [vmem:[#allocation5 + $0x60] ss:$8 sps:$4 sm:$0xff]   ;;  %v892_v3 = vld [vmem:[#allocation5 + $0x50] ss:$8 sps:$4 sm:$0xff]   ;;  %v898_v4 = vld [vmem:[#allocation5 + $0xf4] ss:$8 sps:$4 sm:$0xff]  }
  0x27   :  { %822 = vmatpush3.bf16.msra.mxu0 %v890_v1  ;;  %v900_v5 = vld [vmem:[#allocation5 + $0xf0] ss:$8 sps:$4 sm:$0xff]   ;;  %v893_v6 = vld [vmem:[#allocation5 + $0x40] ss:$8 sps:$4 sm:$0xff]   ;;  %v901_v7 = vld [vmem:[#allocation5 + $0xe4] ss:$8 sps:$4 sm:$0xff]   ;;  %271 = vmatprep.subr.bf16.mxu1 %v898_v4 }
  0x28   :  { %823 = vmatprep.subr.bf16.mxu0 %v1045_v0  ;;  %272 = vmatpush1.bf16.msra.mxu1 %v900_v5  ;;  %v903_v8 = vld [vmem:[#allocation5 + $0xe0] ss:$8 sps:$4 sm:$0xff]   ;;  %v904_v9 = vld [vmem:[#allocation5 + $0xd4] ss:$8 sps:$4 sm:$0xff]   ;;  %v894_v10 = vld [vmem:[#allocation5 + $0x30] ss:$8 sps:$4 sm:$0xff]  }
  0x29   :  { %273 = vmatprep.subr.bf16.mxu1 %v901_v7  ;;  %v906_v11 = vld [vmem:[#allocation5 + $0xd0] ss:$8 sps:$4 sm:$0xff]   ;;  %v895_v12 = vld [vmem:[#allocation5 + $0x20] ss:$8 sps:$4 sm:$0xff]   ;;  %v907_v13 = vld [vmem:[#allocation5 + $0xc4] ss:$8 sps:$4 sm:$0xff]  }
  0x2a   :  { %v909_v14 = vld [vmem:[#allocation5 + $0xc0] ss:$8 sps:$4 sm:$0xff]   ;;  %v910_v15 = vld [vmem:[#allocation5 + $0xb4] ss:$8 sps:$4 sm:$0xff]   ;;  %v896_v16 = vld [vmem:[#allocation5 + $0x10] ss:$8 sps:$4 sm:$0xff]  }
  0x2b   :  { %824 = vmatpush3.bf16.msra.mxu0 %v891_v2  ;;  %v912_v17 = vld [vmem:[#allocation5 + $0xb0] ss:$8 sps:$4 sm:$0xff]   ;;  %v913_v18 = vld [vmem:[#allocation5 + $0xa4] ss:$8 sps:$4 sm:$0xff]   ;;  %v897_v19 = vld [vmem:[#allocation5] ss:$8 sps:$4 sm:$0xff]  }
  0x2c   :  { %825 = vmatprep.subr.bf16.mxu0 %v1045_v0  ;;  %274 = vmatpush1.bf16.msra.mxu1 %v903_v8  ;;  %v53_v20 = vld [vmem:[#allocation2] sm:$0xff]  ;;  %v915_v21 = vld [vmem:[#allocation5 + $0xa0] ss:$8 sps:$4 sm:$0xff]   ;;  %v919_v25 = vld [vmem:[#allocation5 + $0x84] ss:$8 sps:$4 sm:$0xff]   ;;  %v1047_v27 = vmov 0  }
  0x2d   :  { %275 = vmatprep.subr.bf16.mxu1 %v904_v9  ;;  %v916_v22 = vld [vmem:[#allocation5 + $0x94] ss:$8 sps:$4 sm:$0xff]   ;;  %v71_v23 = vpack.c.bf16 %v53_v20, %v53_v20  ;;  %v918_v24 = vld [vmem:[#allocation5 + $0x90] ss:$8 sps:$4 sm:$0xff]   ;;  %v921_v26 = vld [vmem:[#allocation5 + $0x80] ss:$8 sps:$4 sm:$0xff]   ;;  %303 = vmatprep.mubr.bf16.mxu1 %v1047_v27 }
  0x2e   :  { %v922_v28 = vld [vmem:[#allocation5 + $0x1f0] ss:$8 sps:$4 sm:$0xff]   ;;  %v924_v30 = vld [vmem:[#allocation5 + $0x1e0] ss:$8 sps:$4 sm:$0xff]   ;;  %v182_v58 = vshrl.u32 %v181_v57, 7  ;;  %s1048_s0 = smov [#allocation8]  }
  0x2f   :  { %826 = vmatpush3.bf16.msra.mxu0 %v892_v3  ;;  %v923_v29 = vld [vmem:[#allocation5 + $0x170] ss:$8 sps:$4 sm:$0xff]   ;;  %v925_v31 = vld [vmem:[#allocation5 + $0x160] ss:$8 sps:$4 sm:$0xff]   ;;  %s706_s2 = sshll.u32 %s1048_s0, 4  ;;  %s707_s2 = int_to_ptr.vmem [resolvable:$true] %s706_s2 }
  0x30   :  { %827 = vmatprep.subr.bf16.mxu0 %v1045_v0  ;;  %276 = vmatpush1.bf16.msra.mxu1 %v906_v11  ;;  %v926_v32 = vld [vmem:[#allocation5 + $0x1d0] ss:$8 sps:$4 sm:$0xff]   ;;  %v928_v34 = vld [vmem:[#allocation5 + $0x1c0] ss:$8 sps:$4 sm:$0xff]   ;;  %v183_v59 = vsub.s32 0, %v182_v58  ;;  %v187_v61 = vsub.s32 1, %v182_v58  ;;  %p1019_p2 = scmp.lt.s32.totalorder %s707_s2, %s707_s2 }
  0x31   :  { %277 = vmatprep.subr.bf16.mxu1 %v907_v13  ;;  %v927_v33 = vld [vmem:[#allocation5 + $0x150] ss:$8 sps:$4 sm:$0xff]   ;;  %v929_v35 = vld [vmem:[#allocation5 + $0x140] ss:$8 sps:$4 sm:$0xff]   ;;  %s1014_s28 = scalar_lea.vmem %s707_s2, 128 }
  0x32   :  { %v930_v36 = vld [vmem:[#allocation5 + $0x1b0] ss:$8 sps:$4 sm:$0xff]   ;;  %v932_v38 = vld [vmem:[#allocation5 + $0x1a0] ss:$8 sps:$4 sm:$0xff]   ;;  %p1015_p1 = scmp.ne.s32.totalorder %s707_s2, %s1014_s28  ;;  %p1020_p3 = scmp.lt.s32.totalorder %s1014_s28, %s1014_s28 }
  0x33   :  { %828 = vmatpush3.bf16.msra.mxu0 %v893_v6  ;;  %v931_v37 = vld [vmem:[#allocation5 + $0x130] ss:$8 sps:$4 sm:$0xff]   ;;  %v933_v39 = vld [vmem:[#allocation5 + $0x120] ss:$8 sps:$4 sm:$0xff]  }
  0x34   :  { %829 = vmatprep.subr.bf16.mxu0 %v1045_v0  ;;  %278 = vmatpush1.bf16.msra.mxu1 %v909_v14  ;;  %v70_v40 = vld [vmem:[#allocation7] ss:$0 sm:$0xff]  ;;  %v934_v48 = vld [vmem:[#allocation5 + $0x190] ss:$8 sps:$4 sm:$0xff]   ;;  %p1021_p4 = por %p1020_p3, %p1019_p2 }
  0x35   :  { %279 = vmatprep.subr.bf16.mxu1 %v910_v15  ;;  %v935_v49 = vld [vmem:[#allocation5 + $0x110] ss:$8 sps:$4 sm:$0xff]   ;;  %v936_v50 = vld [vmem:[#allocation5 + $0x180] ss:$8 sps:$4 sm:$0xff]  }
  0x36   :  { %v937_v51 = vld [vmem:[#allocation5 + $0x100] ss:$8 sps:$4 sm:$0xff]   ;;  %v938_v52 = vld [vmem:[#allocation5 + $0x270] ss:$8 sps:$4 sm:$0xff]   ;;  %p1022_p5 = pnand %p1021_p4, %p1015_p1 }
  0x37   :  { %830 = vmatpush3.bf16.msra.mxu0 %v894_v10  ;;  %v939_v53 = vld [vmem:[#allocation5 + $0x260] ss:$8 sps:$4 sm:$0xff]   ;;  %v940_v54 = vld [vmem:[#allocation5 + $0x250] ss:$8 sps:$4 sm:$0xff]  }
  0x38   :  { %831 = vmatprep.subr.bf16.mxu0 %v1045_v0  ;;  %280 = vmatpush1.bf16.msra.mxu1 %v912_v17  ;;  %v941_v55 = vld [vmem:[#allocation5 + $0x240] ss:$8 sps:$4 sm:$0xff]   ;;  %v942_v56 = vld [vmem:[#allocation5 + $0x230] ss:$8 sps:$4 sm:$0xff]  }
  0x39   :  { %281 = vmatprep.subr.bf16.mxu1 %v913_v18  ;;  %v178_v60 = vld [vmem:[#allocation7 + $0x1] ss:$8 sm:$0x3]  ;;  %v946_v14 = vld [vmem:[#allocation5 + $0x2f0] ss:$8 sps:$4 sm:$0xff]  }
  0x3a   :  { %v184_v62 = vrot.slane %v178_v60, %v183_v59  ;;  %v188_v63 = vrot.slane %v178_v60, %v187_v61  ;;  %v943_v11 = vld [vmem:[#allocation5 + $0x220] ss:$8 sps:$4 sm:$0xff]   ;;  %v950_v18 = vld [vmem:[#allocation5 + $0x2b0] ss:$8 sps:$4 sm:$0xff]  }
  0x3b   :  { %832 = vmatpush3.bf16.msra.mxu0 %v895_v12  ;;  %v944_v12 = vld [vmem:[#allocation5 + $0x210] ss:$8 sps:$4 sm:$0xff]   ;;  %v945_v13 = vld [vmem:[#allocation5 + $0x200] ss:$8 sps:$4 sm:$0xff]  }
  0x3c   :  { %833 = vmatprep.subr.bf16.mxu0 %v1045_v0  ;;  %282 = vmatpush1.bf16.msra.mxu1 %v915_v21  ;;  %v947_v15 = vld [vmem:[#allocation5 + $0x2e0] ss:$8 sps:$4 sm:$0xff]  }
  0x3d   :  { %283 = vmatprep.subr.bf16.mxu1 %v916_v22  ;;  %v949_v17 = vld [vmem:[#allocation5 + $0x2c0] ss:$8 sps:$4 sm:$0xff]  }
  0x3e   :  { %v346_v21 = vld [vmem:[#allocation7 + $0x2] ss:$0 sm:$0xff] }
  0x3f   :  { %834 = vmatpush3.bf16.msra.mxu0 %v896_v16  ;;  %v948_v16 = vld [vmem:[#allocation5 + $0x2d0] ss:$8 sps:$4 sm:$0xff]  }
  0x40   :  { %835 = vmatprep.subr.bf16.mxu0 %v1045_v0  ;;  %284 = vmatpush1.bf16.msra.mxu1 %v918_v24 }
  0x41   :  { %285 = vmatprep.subr.bf16.mxu1 %v919_v25 }
  0x43   :  { %836 = vmatpush3.bf16.msra.mxu0 %v897_v19  ;;  %v951_v19 = vld [vmem:[#allocation5 + $0x2a0] ss:$8 sps:$4 sm:$0xff]  }
  0x44   :  { %286 = vmatpush1.bf16.msra.mxu1 %v921_v26  ;;  %781 = vmatprep.subr.bf16.mxu0 %v922_v28 }
  0x45   :  { %841 = vmatprep.subr.bf16.mxu1 %v1045_v0 }
  0x46   :  { %838 = vmatmul.mubr.bf16.vlgmr.msra.gmra.mxu0 %v71_v23 }
  0x47   :  { %782 = vmatpush3.bf16.msra.mxu0 %v923_v29  ;;  %v952_v29 = vld [vmem:[#allocation5 + $0x290] ss:$8 sps:$4 sm:$0xff]  }
  0x48   :  { %783 = vmatprep.subr.bf16.mxu0 %v924_v30  ;;  %v953_v30 = vld [vmem:[#allocation5 + $0x280] ss:$8 sps:$4 sm:$0xff]  }
  0x4b   :  { %784 = vmatpush3.bf16.msra.mxu0 %v925_v31  ;;  %v502_v31 = vld [vmem:[#allocation7 + $0x3] ss:$0 sm:$0xff] }
  0x4c   :  { %785 = vmatprep.subr.bf16.mxu0 %v926_v32 }
  0x4f   :  { %786 = vmatpush3.bf16.msra.mxu0 %v927_v33 }
  0x50   :  { %787 = vmatprep.subr.bf16.mxu0 %v928_v34 }
  0x53   :  { %788 = vmatpush3.bf16.msra.mxu0 %v929_v35 }
  0x54   :  { %789 = vmatprep.subr.bf16.mxu0 %v930_v36 }
  0x57   :  { %790 = vmatpush3.bf16.msra.mxu0 %v931_v37 }
  0x58   :  { %791 = vmatprep.subr.bf16.mxu0 %v932_v38 }
  0x5b   :  { %792 = vmatpush3.bf16.msra.mxu0 %v933_v39  ;;  %v609_v39 = vld [vmem:[#allocation7 + $0x4] ss:$0 sm:$0xff] }
  0x5c   :  { %793 = vmatprep.subr.bf16.mxu0 %v934_v48 }
  0x5f   :  { %794 = vmatpush3.bf16.msra.mxu0 %v935_v49 }
  0x60   :  { %795 = vmatprep.subr.bf16.mxu0 %v936_v50 }
  0x63   :  { %796 = vmatpush3.bf16.msra.mxu0 %v937_v51 }
  0x64   :  { %861 = vmatprep.subr.bf16.mxu0 %v1045_v0 }
 0x106   :  { %v154_v41 = vpop.f32.mrf.mxu0 }
 0x107   :  { %v155_v42 = vadd.f32 %v154_v41, %v70_v40 }
 0x108   :  { %v839_v43 = vpop.f32.mrf.mxu0 }
 0x109   :  { %v160_v44 = vmax.f32 %v155_v42, 0.0 }
 0x10a   :  { %v157_v45 = vpop.f32.mrf.mxu0 }
 0x10b   :  { %v179_v46 = vpack.c.bf16 %v160_v44, %v160_v44 }
 0x10c   :  { %v840_v47 = vpop.f32.mrf.mxu0 }
 0x10d   :  { %304 = vmatmul.mubr.bf16.vlgmr.msra.gmra.mxu1 %v179_v46 }
 0x10e   :  { %857 = vmatprep.mubr.msk.bf16.mxu1 %vm1046_vm0, %v1045_v0  ;;  %842 = vmatpush3.bf16.msra.mxu1 %v938_v52 }
 0x10f   :  { %843 = vmatprep.subr.bf16.mxu1 %v1045_v0 }
 0x112   :  { %844 = vmatpush3.bf16.msra.mxu1 %v939_v53 }
 0x113   :  { %845 = vmatprep.subr.bf16.mxu1 %v1045_v0 }
 0x116   :  { %846 = vmatpush3.bf16.msra.mxu1 %v940_v54 }
 0x117   :  { %847 = vmatprep.subr.bf16.mxu1 %v1045_v0 }
 0x11a   :  { %848 = vmatpush3.bf16.msra.mxu1 %v941_v55 }
 0x11b   :  { %849 = vmatprep.subr.bf16.mxu1 %v1045_v0 }
 0x11e   :  { %850 = vmatpush3.bf16.msra.mxu1 %v942_v56 }
 0x11f   :  { %851 = vmatprep.subr.bf16.mxu1 %v1045_v0 }
 0x122   :  { %852 = vmatpush3.bf16.msra.mxu1 %v943_v11 }
 0x123   :  { %853 = vmatprep.subr.bf16.mxu1 %v1045_v0 }
 0x126   :  { %854 = vmatpush3.bf16.msra.mxu1 %v944_v12 }
 0x127   :  { %855 = vmatprep.subr.bf16.mxu1 %v1045_v0 }
 0x12a   :  { %856 = vmatpush3.bf16.msra.mxu1 %v945_v13 }
 0x1cd   :  { %v305_v1 = vpop.f32.mrf.mxu1 }
 0x1ce   :  { %v306_v2 = vadd.f32 %v305_v1, %v184_v62 }
 0x1cf   :  { %v307_v3 = vpop.f32.mrf.mxu1 }
 0x1d0   :  { %v308_v4 = vadd.f32 %v307_v3, %v188_v63  ;;  %v312_v5 = vmax.f32 %v306_v2, 0.0 }
 0x1d1   :  { %v309_v6 = vpop.f32.mrf.mxu1 }
 0x1d2   :  { %v313_v7 = vmax.f32 %v308_v4, 0.0  ;;  %v347_v10 = vpack.c.bf16 %v312_v5, %v312_v5 }
 0x1d3   :  { %v310_v8 = vpop.f32.mrf.mxu1 }
 0x1d4   :  { %v348_v9 = vpack.c.bf16 %v313_v7, %v313_v7 }
 0x1d6   :  { %477 = vmatprep.mubr.bf16.mxu0 %v348_v9 }
 0x1d7   :  { %478 = vmatmul.mubr.bf16.vlgmr.msra.gmra.mxu0 %v347_v10 }
 0x1d8   :  { %877 = vmatprep.mubr.msk.bf16.mxu0 %vm1046_vm0, %v1045_v0  ;;  %862 = vmatpush3.bf16.msra.mxu0 %v946_v14 }
 0x1d9   :  { %863 = vmatprep.subr.bf16.mxu0 %v1045_v0 }
 0x1dc   :  { %864 = vmatpush3.bf16.msra.mxu0 %v947_v15 }
 0x1dd   :  { %865 = vmatprep.subr.bf16.mxu0 %v1045_v0 }
 0x1e0   :  { %866 = vmatpush3.bf16.msra.mxu0 %v948_v16 }
 0x1e1   :  { %867 = vmatprep.subr.bf16.mxu0 %v1045_v0 }
 0x1e4   :  { %868 = vmatpush3.bf16.msra.mxu0 %v949_v17 }
 0x1e5   :  { %869 = vmatprep.subr.bf16.mxu0 %v1045_v0 }
 0x1e8   :  { %870 = vmatpush3.bf16.msra.mxu0 %v950_v18 }
 0x1e9   :  { %871 = vmatprep.subr.bf16.mxu0 %v1045_v0 }
 0x1ec   :  { %872 = vmatpush3.bf16.msra.mxu0 %v951_v19 }
 0x1ed   :  { %873 = vmatprep.subr.bf16.mxu0 %v1045_v0 }
 0x1f0   :  { %874 = vmatpush3.bf16.msra.mxu0 %v952_v29 }
 0x1f1   :  { %875 = vmatprep.subr.bf16.mxu0 %v1045_v0 }
 0x1f4   :  { %876 = vmatpush3.bf16.msra.mxu0 %v953_v30 }
 0x297   :  { %v797_v20 = vpop.f32.mrf.mxu0 }
 0x299   :  { %v798_v22 = vpop.f32.mrf.mxu0 }
 0x29a   :  { %v799_v23 = vadd.f32 %v798_v22, %v797_v20 }
 0x29b   :  { %v800_v24 = vpop.f32.mrf.mxu0 }
 0x29c   :  { %v480_v25 = vadd.f32 %v799_v23, %v346_v21 }
 0x29d   :  { %v801_v26 = vpop.f32.mrf.mxu0 }
 0x29e   :  { %v485_v27 = vmax.f32 %v480_v25, 0.0 }
 0x2a0   :  { %v503_v28 = vpack.c.bf16 %v485_v27, %v485_v27 }
 0x2a2   :  { %858 = vmatmul.mubr.bf16.vlgmr.msra.gmra.mxu1 %v503_v28 }
 0x362   :  { %v586_v32 = vpop.f32.mrf.mxu1 }
 0x363   :  { %v587_v33 = vadd.f32 %v586_v32, %v502_v31 }
 0x364   :  { %v859_v34 = vpop.f32.mrf.mxu1 }
 0x365   :  { %v592_v35 = vmax.f32 %v587_v33, 0.0 }
 0x366   :  { %v589_v36 = vpop.f32.mrf.mxu1 }
 0x367   :  { %v610_v37 = vpack.c.bf16 %v592_v35, %v592_v35 }
 0x368   :  { %v860_v38 = vpop.f32.mrf.mxu1 }
 0x369   :  { %878 = vmatmul.mubr.bf16.vlgmr.msra.gmra.mxu0 %v610_v37 }
 0x429   :  { %v693_v40 = vpop.f32.mrf.mxu0 }
 0x42a   :  { %v694_v41 = vadd.f32 %v693_v40, %v609_v39 }
 0x42b   :  { %v879_v42 = vpop.f32.mrf.mxu0 }
 0x42c   :  { %699 = vst [vmem:[#allocation8] sm:$0xff] %v694_v41 }
 0x42d   :  { %v696_v0 = vpop.f32.mrf.mxu0 }
 0x42e   :  { %1025 = shalt.err (!%p1022_p5)
}
 0x42f   :  { %709 = dma.vmem_to_hbm [thread:$0]  %s707_s2, 128, %s1114_s3, [#allocation4]   ;;  %v880_v43 = vpop.f32.mrf.mxu0 }
 0x430   :  { %1038 = dma.done.wait [#allocation4], 128  }
 0x431   :  { %1039 = vsyncadd [#allocation4], 4294967168 }
 0x432   :  { %713 = vsyncpa [#allocation3], 1 }
 0x433   :  { %714 = vsyncpa [#allocation6], 1 }
 0x434   :  { %715 = vsyncpa [#allocation4], 1 }

</bundles_post_ra>
